<compile_context>
chip_gen: v5e
topology: v5e:2x2
jax: 0.10.0
libtpu: 0.0.40
codegen_flags: <defaults>
</compile_context>

<pallas_src>
import jax
import jax.numpy as jnp
from jax.experimental import pallas as pl
from jax.experimental.pallas import tpu as pltpu


# Lane-dense repack widths, tried largest first so the flatten->2D reshape is a
# free (no-copy) reshape whenever one of them divides the element count.
_LANE_CANDIDATES = (2048, 1024, 512, 256, 128)
_DEFAULT_LANE = 512

# Rows per grid step: 1024 x 512 x 4B = 2 MiB per f32 buffer; with double
# buffering of input + output that is ~8 MiB of VMEM on every generation.
_DEFAULT_TILE_ROWS = 1024

# Below this element count, per-call / per-step overhead dominates; a plain
# (XLA-fused) scalar multiply is faster than launching a Pallas kernel.
_DEFAULT_MIN_PALLAS_ELEMENTS = 1 << 15


def _scale_kernel(factor_ref, x_ref, o_ref):
    # factor_ref: (1,) float32 scalar-prefetch ref in SMEM (already the
    # effective multiplier; the fitted check is done in the wrapper).
    # x_ref / o_ref: (block_rows, lane) VMEM tiles.
    # Multiply in f32 and cast back to the activation dtype (matches PyTorch's
    # behavior for bf16 activations with a float32 scale buffer).
    o_ref[...] = (x_ref[...].astype(jnp.float32) * factor_ref[0]).astype(o_ref.dtype)


def _sublane_multiple(dtype) -> int:
    # Native sublane packing: 8 rows for 4-byte, 16 for 2-byte, 32 for 1-byte.
    itemsize = jnp.dtype(dtype).itemsize
    return 8 * max(1, 4 // itemsize)


def scale_factor_forward(x, scale_factor, *, dim_size=None,
                         tile_rows=_DEFAULT_TILE_ROWS,
                         min_pallas_elements=_DEFAULT_MIN_PALLAS_ELEMENTS):
    """JAX/Pallas equivalent of ScaleFactor.forward(x).

    fitted (scale_factor != 0)  -> x * scale_factor
    not fitted (scale_factor==0) -> x unchanged
    """
    if dim_size is not None:
        assert x.shape[-1] == dim_size, (
            f"Expected {dim_size} but got x.shape[-1]={x.shape[-1]!r}"
        )

    # ---- effective multiplier (fitted-check hoisted out of the kernel) -----
    concrete = None
    if isinstance(scale_factor, (int, float)):
        concrete = float(scale_factor)

    if concrete is not None:
        if concrete == 0.0 or concrete == 1.0:
            # Un-fitted default (0.0) or no-op scale: pure identity, skip all
            # HBM traffic and the kernel launch entirely.
            return x
        factor = jnp.full((1,), concrete, dtype=jnp.float32)
    else:
        s = jnp.asarray(scale_factor, dtype=jnp.float32).reshape(())
        factor = jnp.where(s == 0.0, jnp.float32(1.0), s).reshape((1,))

    total = int(x.size)
    if total == 0:
        return x
    if total < min_pallas_elements:
        # Tiny activations: launch overhead dominates; let XLA fuse a multiply.
        return (x.astype(jnp.float32) * factor[0]).astype(x.dtype)

    orig_shape = x.shape
    dtype = x.dtype

    # ---- lane-dense repack of the flattened tensor --------------------------
    lane = None
    for cand in _LANE_CANDIDATES:
        if total % cand == 0:
            lane = cand
            break

    x_flat = x.reshape(-1)
    if lane is None:
        # Awkward size: pad the tail (one extra copy of x; correctness first).
        lane = _DEFAULT_LANE
        pad = (-total) % lane
        x_flat = jnp.concatenate([x_flat, jnp.zeros((pad,), dtype=dtype)])
    else:
        pad = 0

    rows = (total + pad) // lane
    x2d = x_flat.reshape(rows, lane)

    # ---- row tiling ----------------------------------------------------------
    sub = _sublane_multiple(dtype)
    block_rows = max(sub, (int(tile_rows) // sub) * sub)
    if block_rows >= rows:
        block_rows = rows  # single grid step; full-extent block is always legal
    grid = (pl.cdiv(rows, block_rows),)

    out2d = pl.pallas_call(
        _scale_kernel,
        out_shape=jax.ShapeDtypeStruct((rows, lane), dtype),
        grid_spec=pltpu.PrefetchScalarGridSpec(
            num_scalar_prefetch=1,  # factor -> SMEM, passed first to kernel
            grid=grid,
            in_specs=[pl.BlockSpec((block_rows, lane), lambda i, f: (i, 0))],
            out_specs=pl.BlockSpec((block_rows, lane), lambda i, f: (i, 0)),
        ),
        compiler_params=pltpu.CompilerParams(
            # No cross-iteration carry: let v7x shard the stream across both
            # TensorCores; neutral on single-core v5e/v6e.
            dimension_semantics=("parallel",),
        ),
        # Reuse x2d's HBM buffer for the output (operand 0 is the scalar
        # prefetch arg, operand 1 is x2d).
        input_output_aliases={1: 0},
    )(factor, x2d)

    out_flat = out2d.reshape(-1)
    if pad:
        out_flat = out_flat[:total]
    return out_flat.reshape(orig_shape)


# TODO(synk): the `_observe` / `fit_` / `fit_context_` statistics accumulation
# (running variance_in / variance_out / n_samples dict mutation), the
# `_enforce_consistency` state-dict hook and the `index_fn` callback are
# host-side Python bookkeeping used only during calibration / checkpoint
# loading and do not affect the returned tensor, so they are not kernelized.


if __name__ == "__main__":
    key = jax.random.PRNGKey(0)
    k1, k2, k3 = jax.random.split(key, 3)

    dim_size = 32

    # Case 1: fitted scale, small f32 activation (batch=8, hidden=32).
    # Force the Pallas path (min_pallas_elements=0) so the kernel is exercised.
    x = jax.random.normal(k1, (8, dim_size), dtype=jnp.float32)
    scale_fitted = 1.75
    y = scale_factor_forward(x, scale_fitted, dim_size=dim_size,
                             min_pallas_elements=0)
    y = jax.block_until_ready(y)
    assert y.shape == x.shape and y.dtype == x.dtype
    assert jnp.allclose(y, x * scale_fitted, rtol=1e-6, atol=1e-6)

    # Case 2: un-fitted (scale_factor == 0.0, the __init__ default) -> identity
    # (short-circuited, no kernel launch, no HBM traffic).
    y0 = jax.block_until_ready(
        scale_factor_forward(x, 0.0, dim_size=dim_size, min_pallas_elements=0))
    assert jnp.allclose(y0, x)

    # Case 3: traced (device-array) scale, bf16 activation, ragged row count:
    # exercises the lane-dense repack (19200 elems -> 75 x 256), a multi-step
    # grid and a partial last block (tile_rows=16 -> 5 grid steps).
    x3 = jax.random.normal(k2, (600, dim_size), dtype=jnp.bfloat16)
    scale_arr = jnp.asarray(0.5, dtype=jnp.float32)
    y3 = jax.block_until_ready(
        scale_factor_forward(x3, scale_arr, dim_size=dim_size,
                             min_pallas_elements=0, tile_rows=16))
    ref3 = (x3.astype(jnp.float32) * 0.5).astype(jnp.bfloat16)
    assert y3.dtype == jnp.bfloat16
    assert jnp.allclose(y3.astype(jnp.float32), ref3.astype(jnp.float32),
                        rtol=1e-2, atol=1e-2)

    # Case 4: awkward size (65 elements) that takes the tail-padding path.
    x4 = jax.random.normal(k3, (5, 13), dtype=jnp.float32)
    y4 = jax.block_until_ready(
        scale_factor_forward(x4, 2.5, min_pallas_elements=0))
    assert jnp.allclose(y4, x4 * 2.5, rtol=1e-6, atol=1e-6)

    print("KERNEL_OK")
</pallas_src>

<mosaic_0001>
module attributes {stable_mosaic.version = 11 : i64} {
  func.func @_scale_kernel(%arg0: i32, %arg1: memref<1xf32, #tpu.memory_space<smem>>, %arg2: memref<1x256xf32, #tpu.memory_space<vmem>>, %arg3: memref<1x256xf32, #tpu.memory_space<vmem>>) attributes {dimension_semantics = [#tpu.dimension_semantics<parallel>], iteration_bounds = array<i64: 1>, scalar_prefetch = 1 : i64, scratch_operands = 0 : i64, tpu.core_type = #tpu.core_type<tc>, window_params = [{transform_indices = @transform_0, window_bounds = array<i64: 1, 256>}, {transform_indices = @transform_1, window_bounds = array<i64: 1, 256>}]} {
    %c0 = arith.constant 0 : index
    %c0_0 = arith.constant 0 : index
    %0 = vector.load %arg2[%c0, %c0_0] : memref<1x256xf32, #tpu.memory_space<vmem>>, vector<1x256xf32>
    %c0_1 = arith.constant 0 : index
    %1 = memref.load %arg1[%c0_1] : memref<1xf32, #tpu.memory_space<smem>>
    %2 = vector.broadcast %1 : f32 to vector<1x256xf32>
    %3 = arith.mulf %0, %2 : vector<1x256xf32>
    %c0_2 = arith.constant 0 : index
    %c0_3 = arith.constant 0 : index
    %4 = vector.load %arg3[%c0_2, %c0_3] : memref<1x256xf32, #tpu.memory_space<vmem>>, vector<1x256xf32>
    tpu.vector_store %arg3[%c0_2, %c0_3], %3 {strides = array<i32>} : memref<1x256xf32, #tpu.memory_space<vmem>>, vector<1x256xf32>,
    return
  }
  func.func @transform_0(%arg0: i32, %arg1: memref<1xf32, #tpu.memory_space<smem>>) -> (i32, i32) {
    %c0_i32 = arith.constant 0 : i32
    %c0_i32_0 = arith.constant 0 : i32
    return %arg0, %c0_i32 : i32, i32
  }
  func.func @transform_1(%arg0: i32, %arg1: memref<1xf32, #tpu.memory_space<smem>>) -> (i32, i32) {
    %c0_i32 = arith.constant 0 : i32
    %c0_i32_0 = arith.constant 0 : i32
    return %arg0, %c0_i32 : i32, i32
  }
}

</mosaic_0001>

<bundles_post_ra>
// kernel: tpu_custom_call.1
= control target key start
LH: loop header
LB: loop body
LE: loop exit
PB: predicated region body
PF: predicated region fallthrough
CT: control target
= control target key end

     0   :  { %8 = vsyncpa [#allocation5], 0  ;;  %s131_s0 = inlined_call_operand.<no memory space> [shape: f32[1], index: 0, kind: input, shape index: {}]   ;;  %s132_s1 = inlined_call_operand.hbm [shape: f32[1,256], index: 1, kind: input, shape index: {}, may-alias: {1,2}]   ;;  %s133_s2 = inlined_call_operand.hbm [shape: f32[1,256], index: 2, kind: output, shape index: {}, may-alias: {1,2}]  }
   0x1   :  { %9 = vsyncpa [#allocation6], 0  ;;  %s15_s11 = sshll.u32 %s132_s1, 4  ;;  %s105_s12 = smov [#allocation4]   ;;  %s16_s11 = int_to_ptr.hbm [resolvable:$true] %s15_s11 }
   0x2   :  { %s17_s13 = sshll.u32 %s105_s12, 4  ;;  %s18_s13 = int_to_ptr.vmem [resolvable:$true] %s17_s13 }
   0x3   :  { %20 = dma.hbm_to_vmem [thread:$0]  %s16_s11, 32, %s18_s13, [#allocation5]  }
   0x4   :  { %101 = dma.done.wait [#allocation5], 32  }
   0x5   :  { %102 = vsyncadd [#allocation5], 4294967264  ;;  %v29_v0 = vlaneseq  ;;  %v27_v1 = vstv %s131_s0  ;;  %s106_s16 = smov [#allocation7]   ;;  %s41_s20 = sshll.u32 %s133_s2, 4  ;;  %v25_v2 = vld [vmem:[#allocation4] sm:$0x3]  ;;  %s42_s20 = int_to_ptr.hbm [resolvable:$true] %s41_s20 }
   0x6   :  { %s39_s17 = sshll.u32 %s106_s16, 4  ;;  %v28_v3 = vmul.f32 %v27_v1, %v25_v2  ;;  %s40_s17 = int_to_ptr.vmem [resolvable:$true] %s39_s17 }
   0x7   :  { %vm31_vm0 = vcmp.lt.s32.totalorder %v29_v0, 256 }
   0x8   :  { %33 = vst.msk [vmem:[#allocation7] sm:$0x3] %vm31_vm0, %v28_v3 }
   0x9   :  { %44 = dma.vmem_to_hbm [thread:$0]  %s40_s17, 32, %s42_s20, [#allocation6]  }
   0xa   :  { %103 = dma.done.wait [#allocation6], 32  }
   0xb   :  { %104 = vsyncadd [#allocation6], 4294967264 }
   0xc   :  { %49 = vsyncpa [#allocation5], 1 }
   0xd   :  { %50 = vsyncpa [#allocation6], 1 }

</bundles_post_ra>
